<compile_context>
chip_gen: v6e
topology: v6e:2x2x1
jax: 0.10.0
libtpu: 0.0.40
codegen_flags: <defaults>
</compile_context>

<pallas_src>
from functools import partial

import jax
import jax.numpy as jnp
from jax import lax
from jax.experimental import pallas as pl
from jax.experimental.pallas import tpu as pltpu


# ----------------------------------------------------------------------------
# Kernels
# ----------------------------------------------------------------------------
def _se_fused_kernel(x_ref, w1t_ref, b1_ref, w2t_ref, b2_ref, o_ref, *, inv_hw):
    # x_ref/o_ref: (TN, C, HW)   w1t_ref: (C, rd)  b1_ref: (1, rd)
    # w2t_ref: (rd, C)           b2_ref: (1, C)
    # Spatial pooled sum accumulated in f32; divide by the true HW (no padding).
    s = jnp.sum(x_ref[...], axis=2, dtype=jnp.float32) * inv_hw          # (TN, C)

    # conv_reduce (1x1 conv == matmul) + bias + SiLU
    h = jnp.dot(s, w1t_ref[...].astype(jnp.float32),
                preferred_element_type=jnp.float32) + b1_ref[...]        # (TN, rd)
    h = h * jax.nn.sigmoid(h)

    # conv_expand + bias + Sigmoid gate
    g = jnp.dot(h, w2t_ref[...].astype(jnp.float32),
                preferred_element_type=jnp.float32) + b2_ref[...]        # (TN, C)
    g = jax.nn.sigmoid(g)

    # Deliberate: scale in the native activation dtype (cast of g happens once
    # per (TN, C), hoisted out of the lane broadcast).  Exact for f32 inputs.
    o_ref[...] = x_ref[...] * g.astype(o_ref.dtype)[:, :, None]


def _se_gate_kernel(x_ref, w1t_ref, b1_ref, w2t_ref, b2_ref, g_ref, acc_ref, *,
                    hw, hw_tile, inv_hw):
    # Fallback pass 1: HW-tiled pooling (masked tail) + gate computation.
    # x_ref: (TN, C, hw_tile)  g_ref: (TN, C, 1) f32  acc_ref: (TN, C) f32
    k = pl.program_id(1)

    @pl.when(k == 0)
    def _init():
        acc_ref[...] = jnp.zeros_like(acc_ref)

    # Mask lanes past the true HW in the (possibly partial) last tile so the
    # out-of-bounds garbage never enters the spatial sum.
    lane = lax.broadcasted_iota(jnp.int32, x_ref.shape, 2) + k * hw_tile
    xf = jnp.where(lane < hw, x_ref[...].astype(jnp.float32), 0.0)
    acc_ref[...] += jnp.sum(xf, axis=2)

    @pl.when(k == pl.num_programs(1) - 1)
    def _finalize():
        s = acc_ref[...] * inv_hw                                        # (TN, C)
        h = jnp.dot(s, w1t_ref[...].astype(jnp.float32),
                    preferred_element_type=jnp.float32) + b1_ref[...]
        h = h * jax.nn.sigmoid(h)
        g = jnp.dot(h, w2t_ref[...].astype(jnp.float32),
                    preferred_element_type=jnp.float32) + b2_ref[...]
        g_ref[...] = jax.nn.sigmoid(g)[:, :, None]


def _se_scale_kernel(x_ref, g_ref, o_ref):
    # Fallback pass 2: elementwise rescale; lane-broadcast of the gate.
    # Out-of-bounds lanes of a partial last tile are discarded by the masked
    # writeback, so no in-kernel masking is needed here.
    o_ref[...] = x_ref[...] * g_ref[...].astype(o_ref.dtype)


# ----------------------------------------------------------------------------
# Wrapper
# ----------------------------------------------------------------------------
def _cdiv(a, b):
    return -(-a // b)


def _vmem_capacity_bytes():
    """Per-TensorCore VMEM capacity; conservative fallback if query unavailable."""
    try:
        cap = int(getattr(pltpu.get_tpu_info(), "vmem_capacity_bytes", 0))
        if cap > 0:
            return cap
    except Exception:
        pass
    return 64 * 1024 * 1024  # v7x value (the smallest across v5e/v6e/v7x)


def _largest_divisor_leq(n, upper):
    upper = max(1, min(n, upper))
    for d in range(upper, 0, -1):
        if n % d == 0:
            return d
    return 1


def squeeze_excite(x_nchw, w1, b1, w2, b2, *, block_n=None, hw_tile=None,
                   force_two_pass=False, min_grid_steps=8):
    """x_nchw: (N, C, H, W); w1: (rd, C); b1: (rd,); w2: (C, rd); b2: (C,)."""
    N, C, H, W = x_nchw.shape
    rd = w1.shape[0]
    HW = H * W
    itemsize = jnp.dtype(x_nchw.dtype).itemsize

    # Free reshape (contiguous NCHW): no pad, no extra HBM pass over x.
    x_flat = x_nchw.reshape(N, C, HW)

    # Host-side glue: pre-transpose weights so the kernel does row-major matmuls.
    w1t = w1.T                                    # (C, rd)
    w2t = w2.T                                    # (rd, C)
    b1_2d = b1.reshape(1, rd).astype(jnp.float32)
    b2_2d = b2.reshape(1, C).astype(jnp.float32)
    weight_bytes = int((w1t.size + w2t.size) * jnp.dtype(w1.dtype).itemsize
                       + (rd + C) * 4)

    # Generation-aware VMEM budget.
    vmem_cap = _vmem_capacity_bytes()             # 64 MiB (v7x) / 128 MiB (v5e/v6e)
    vmem_limit = (vmem_cap * 7) // 8
    usable = vmem_limit - weight_bytes - 2 * 1024 * 1024

    per_img_bytes = C * HW * itemsize
    # in + out blocks, each double-buffered (factor 4) + slack -> factor 5.
    one_pass_ok = (5 * per_img_bytes <= usable) and not force_two_pass

    if one_pass_ok:
        if block_n is None:
            fit_bn = max(1, usable // (5 * per_img_bytes))
            # Keep enough grid steps for megacore sharding + DMA pipelining.
            target = min(fit_bn, max(1, _cdiv(N, min_grid_steps)))
            block_n = _largest_divisor_leq(N, target)
        block_n = int(min(block_n, N))
        if N % block_n != 0:                      # never pad N
            block_n = _largest_divisor_leq(N, block_n)

        kernel = partial(_se_fused_kernel, inv_hw=1.0 / float(HW))
        out = pl.pallas_call(
            kernel,
            out_shape=jax.ShapeDtypeStruct((N, C, HW), x_nchw.dtype),
            grid=(N // block_n,),
            in_specs=[
                pl.BlockSpec((block_n, C, HW), lambda i: (i, 0, 0)),
                pl.BlockSpec((C, rd), lambda i: (0, 0)),   # resident weights
                pl.BlockSpec((1, rd), lambda i: (0, 0)),
                pl.BlockSpec((rd, C), lambda i: (0, 0)),
                pl.BlockSpec((1, C), lambda i: (0, 0)),
            ],
            out_specs=pl.BlockSpec((block_n, C, HW), lambda i: (i, 0, 0)),
            compiler_params=pltpu.CompilerParams(
                dimension_semantics=("parallel",),          # megacore on v7x
                vmem_limit_bytes=int(vmem_limit),
            ),
            cost_estimate=pl.CostEstimate(
                flops=2 * N * C * HW + 4 * N * C * rd,
                transcendentals=N * (rd + C),
                bytes_accessed=2 * N * C * HW * itemsize + 2 * weight_bytes,
            ),
        )(x_flat, w1t, b1_2d, w2t, b2_2d)
        return out.reshape(N, C, H, W)

    # ------------------------------------------------------------------------
    # Two-pass fallback: a single (C, HW) image does not fit the VMEM budget.
    # Pass 1 pools over HW tiles (masked tail) and computes the gate; pass 2
    # rescales x tile by tile.  Costs one extra read of x but always compiles.
    # TODO(synk): if even a (C, 128)-lane tile overflows VMEM (huge C), a
    # C-tiled reduction would be needed; not implemented.
    # ------------------------------------------------------------------------
    if hw_tile is None:
        hw_tile = (usable // (5 * C * itemsize)) // 128 * 128
    hw_tile = int(max(128, min(hw_tile, _cdiv(HW, 128) * 128)))
    n_hw = _cdiv(HW, hw_tile)

    per_blk_bytes = C * hw_tile * itemsize
    if block_n is None:
        fit_bn = max(1, usable // (5 * per_blk_bytes))
        target = min(fit_bn, max(1, _cdiv(N, min_grid_steps)))
        block_n = _largest_divisor_leq(N, target)
    block_n = int(min(block_n, N))
    if N % block_n != 0:
        block_n = _largest_divisor_leq(N, block_n)

    gate_kernel = partial(_se_gate_kernel, hw=HW, hw_tile=hw_tile,
                          inv_hw=1.0 / float(HW))
    gate = pl.pallas_call(
        gate_kernel,
        out_shape=jax.ShapeDtypeStruct((N, C, 1), jnp.float32),
        grid=(N // block_n, n_hw),
        in_specs=[
            pl.BlockSpec((block_n, C, hw_tile), lambda i, k: (i, 0, k)),
            pl.BlockSpec((C, rd), lambda i, k: (0, 0)),
            pl.BlockSpec((1, rd), lambda i, k: (0, 0)),
            pl.BlockSpec((rd, C), lambda i, k: (0, 0)),
            pl.BlockSpec((1, C), lambda i, k: (0, 0)),
        ],
        out_specs=pl.BlockSpec((block_n, C, 1), lambda i, k: (i, 0, 0)),
        scratch_shapes=[pltpu.VMEM((block_n, C), jnp.float32)],
        compiler_params=pltpu.CompilerParams(
            dimension_semantics=("parallel", "arbitrary"),
            vmem_limit_bytes=int(vmem_limit),
        ),
        cost_estimate=pl.CostEstimate(
            flops=N * C * HW + 4 * N * C * rd,
            transcendentals=N * (rd + C),
            bytes_accessed=N * C * HW * itemsize + 2 * weight_bytes,
        ),
    )(x_flat, w1t, b1_2d, w2t, b2_2d)

    out = pl.pallas_call(
        _se_scale_kernel,
        out_shape=jax.ShapeDtypeStruct((N, C, HW), x_nchw.dtype),
        grid=(N // block_n, n_hw),
        in_specs=[
            pl.BlockSpec((block_n, C, hw_tile), lambda i, k: (i, 0, k)),
            pl.BlockSpec((block_n, C, 1), lambda i, k: (i, 0, 0)),
        ],
        out_specs=pl.BlockSpec((block_n, C, hw_tile), lambda i, k: (i, 0, k)),
        compiler_params=pltpu.CompilerParams(
            dimension_semantics=("parallel", "parallel"),
            vmem_limit_bytes=int(vmem_limit),
        ),
        cost_estimate=pl.CostEstimate(
            flops=N * C * HW,
            transcendentals=0,
            bytes_accessed=2 * N * C * HW * itemsize,
        ),
    )(x_flat, gate)
    return out.reshape(N, C, H, W)


# ----------------------------------------------------------------------------
# Pure-JAX reference
# ----------------------------------------------------------------------------
def _reference(x, w1, b1, w2, b2):
    s = jnp.mean(x, axis=(2, 3), keepdims=True)                          # (N,C,1,1)
    h = jnp.einsum("nchw,rc->nrhw", s, w1) + b1[None, :, None, None]
    h = h * jax.nn.sigmoid(h)
    g = jnp.einsum("nrhw,cr->nchw", h, w2) + b2[None, :, None, None]
    return x * jax.nn.sigmoid(g)


if __name__ == "__main__":
    key = jax.random.PRNGKey(0)
    N, C, H, W = 2, 4, 16, 16
    rd = max(1, int(C * 0.25))      # rd_channels = max(1, int(in_chs * rd_ratio))

    kx, k1, kb1, k2, kb2, kx2 = jax.random.split(key, 6)
    x = jax.random.normal(kx, (N, C, H, W), dtype=jnp.float32)

    # Deterministic synthetic parameters (shapes match nn.Conv2d(.., 1, bias=True)).
    w1 = jax.random.normal(k1, (rd, C), dtype=jnp.float32) * (1.0 / jnp.sqrt(C))
    b1 = jax.random.normal(kb1, (rd,), dtype=jnp.float32) * 0.1
    w2 = jax.random.normal(k2, (C, rd), dtype=jnp.float32) * (1.0 / jnp.sqrt(rd))
    b2 = jax.random.normal(kb2, (C,), dtype=jnp.float32) * 0.1

    # Primary fused single-pass path (typical SE shapes).
    out = jax.block_until_ready(squeeze_excite(x, w1, b1, w2, b2))
    ref = _reference(x, w1, b1, w2, b2)
    assert out.shape == (N, C, H, W)
    assert jnp.allclose(out, ref, atol=1e-5, rtol=1e-5), "fused path mismatch"

    # Two-pass fallback path, forced so it is exercised: HW=576 is not a
    # multiple of the forced 128-lane tile -> the masked partial tile is covered.
    x2 = jax.random.normal(kx2, (N, C, 24, 24), dtype=jnp.float32)
    out2 = jax.block_until_ready(
        squeeze_excite(x2, w1, b1, w2, b2, force_two_pass=True, hw_tile=128))
    ref2 = _reference(x2, w1, b1, w2, b2)
    assert out2.shape == x2.shape
    assert jnp.allclose(out2, ref2, atol=1e-5, rtol=1e-5), "two-pass path mismatch"

    print("KERNEL_OK")
</pallas_src>

<mosaic_0001>
module attributes {stable_mosaic.version = 11 : i64} {
  func.func @_se_fused_kernel(%arg0: i32, %arg1: memref<1x4x256xf32, #tpu.memory_space<vmem>>, %arg2: memref<4x1xf32, #tpu.memory_space<vmem>>, %arg3: memref<1x1xf32, #tpu.memory_space<vmem>>, %arg4: memref<1x4xf32, #tpu.memory_space<vmem>>, %arg5: memref<1x4xf32, #tpu.memory_space<vmem>>, %arg6: memref<1x4x256xf32, #tpu.memory_space<vmem>>) attributes {dimension_semantics = [#tpu.dimension_semantics<parallel>], iteration_bounds = array<i64: 2>, scalar_prefetch = 0 : i64, scratch_operands = 0 : i64, tpu.core_type = #tpu.core_type<tc>, window_params = [{transform_indices = @transform_0, window_bounds = array<i64: 1, 4, 256>}, {pipeline_mode = #tpu.pipeline_mode<synchronous>, transform_indices = @transform_1, window_bounds = array<i64: 4, 1>}, {pipeline_mode = #tpu.pipeline_mode<synchronous>, transform_indices = @transform_2, window_bounds = array<i64: 1, 1>}, {pipeline_mode = #tpu.pipeline_mode<synchronous>, transform_indices = @transform_3, window_bounds = array<i64: 1, 4>}, {pipeline_mode = #tpu.pipeline_mode<synchronous>, transform_indices = @transform_4, window_bounds = array<i64: 1, 4>}, {transform_indices = @transform_5, window_bounds = array<i64: 1, 4, 256>}]} {
    %c0 = arith.constant 0 : index
    %c0_0 = arith.constant 0 : index
    %c0_1 = arith.constant 0 : index
    %0 = vector.load %arg1[%c0, %c0_0, %c0_1] : memref<1x4x256xf32, #tpu.memory_space<vmem>>, vector<1x4x256xf32>
    %cst = arith.constant dense<0.000000e+00> : vector<1x4xf32>
    %1 = vector.multi_reduction <add>, %0, %cst [2] : vector<1x4x256xf32> to vector<1x4xf32>
    %cst_2 = arith.constant 3.906250e-03 : f32
    %2 = vector.broadcast %cst_2 : f32 to vector<1x4xf32>
    %3 = arith.mulf %1, %2 : vector<1x4xf32>
    %c0_3 = arith.constant 0 : index
    %c0_4 = arith.constant 0 : index
    %4 = vector.load %arg2[%c0_3, %c0_4] : memref<4x1xf32, #tpu.memory_space<vmem>>, vector<4x1xf32>
    %cst_5 = arith.constant dense<0.000000e+00> : vector<1x1xf32>
    %5 = tpu.matmul %3, %4, %cst_5 {dimension_numbers = #tpu.dot_dimension_numbers<[1], [0], [0], [1], [0, 0, 1, 1], [], []>} : vector<1x4xf32>, vector<4x1xf32>, vector<1x1xf32> -> vector<1x1xf32>
    %c0_6 = arith.constant 0 : index
    %c0_7 = arith.constant 0 : index
    %6 = vector.load %arg3[%c0_6, %c0_7] : memref<1x1xf32, #tpu.memory_space<vmem>>, vector<1x1xf32>
    %7 = arith.addf %5, %6 : vector<1x1xf32>
    %8 = arith.negf %7 : vector<1x1xf32>
    %9 = math.exp %8 : vector<1x1xf32>
    %cst_8 = arith.constant 1.000000e+00 : f32
    %10 = vector.broadcast %cst_8 : f32 to vector<1x1xf32>
    %11 = arith.addf %10, %9 : vector<1x1xf32>
    %12 = arith.divf %10, %11 : vector<1x1xf32>
    %13 = arith.mulf %7, %12 : vector<1x1xf32>
    %c0_9 = arith.constant 0 : index
    %c0_10 = arith.constant 0 : index
    %14 = vector.load %arg4[%c0_9, %c0_10] : memref<1x4xf32, #tpu.memory_space<vmem>>, vector<1x4xf32>
    %cst_11 = arith.constant dense<0.000000e+00> : vector<1x4xf32>
    %15 = tpu.matmul %13, %14, %cst_11 {dimension_numbers = #tpu.dot_dimension_numbers<[1], [0], [0], [1], [0, 0, 1, 1], [], []>} : vector<1x1xf32>, vector<1x4xf32>, vector<1x4xf32> -> vector<1x4xf32>
    %c0_12 = arith.constant 0 : index
    %c0_13 = arith.constant 0 : index
    %16 = vector.load %arg5[%c0_12, %c0_13] : memref<1x4xf32, #tpu.memory_space<vmem>>, vector<1x4xf32>
    %17 = arith.addf %15, %16 : vector<1x4xf32>
    %18 = arith.negf %17 : vector<1x4xf32>
    %19 = math.exp %18 : vector<1x4xf32>
    %cst_14 = arith.constant 1.000000e+00 : f32
    %20 = vector.broadcast %cst_14 : f32 to vector<1x4xf32>
    %21 = arith.addf %20, %19 : vector<1x4xf32>
    %22 = arith.divf %20, %21 : vector<1x4xf32>
    %c0_15 = arith.constant 0 : index
    %c0_16 = arith.constant 0 : index
    %c0_17 = arith.constant 0 : index
    %23 = vector.load %arg1[%c0_15, %c0_16, %c0_17] : memref<1x4x256xf32, #tpu.memory_space<vmem>>, vector<1x4x256xf32>
    %24 = vector.shape_cast %22 : vector<1x4xf32> to vector<1x4x1xf32>
    %25 = vector.broadcast %24 : vector<1x4x1xf32> to vector<1x4x256xf32>
    %26 = arith.mulf %23, %25 : vector<1x4x256xf32>
    %c0_18 = arith.constant 0 : index
    %c0_19 = arith.constant 0 : index
    %c0_20 = arith.constant 0 : index
    %27 = vector.load %arg6[%c0_18, %c0_19, %c0_20] : memref<1x4x256xf32, #tpu.memory_space<vmem>>, vector<1x4x256xf32>
    tpu.vector_store %arg6[%c0_18, %c0_19, %c0_20], %26 {strides = array<i32>} : memref<1x4x256xf32, #tpu.memory_space<vmem>>, vector<1x4x256xf32>,
    return
  }
  func.func @transform_0(%arg0: i32) -> (i32, i32, i32) {
    %c0_i32 = arith.constant 0 : i32
    %c0_i32_0 = arith.constant 0 : i32
    %c0_i32_1 = arith.constant 0 : i32
    return %arg0, %c0_i32, %c0_i32_0 : i32, i32, i32
  }
  func.func @transform_1(%arg0: i32) -> (i32, i32) {
    %c0_i32 = arith.constant 0 : i32
    %c0_i32_0 = arith.constant 0 : i32
    %c0_i32_1 = arith.constant 0 : i32
    return %c0_i32, %c0_i32_0 : i32, i32
  }
  func.func @transform_2(%arg0: i32) -> (i32, i32) {
    %c0_i32 = arith.constant 0 : i32
    %c0_i32_0 = arith.constant 0 : i32
    %c0_i32_1 = arith.constant 0 : i32
    return %c0_i32, %c0_i32_0 : i32, i32
  }
  func.func @transform_3(%arg0: i32) -> (i32, i32) {
    %c0_i32 = arith.constant 0 : i32
    %c0_i32_0 = arith.constant 0 : i32
    %c0_i32_1 = arith.constant 0 : i32
    return %c0_i32, %c0_i32_0 : i32, i32
  }
  func.func @transform_4(%arg0: i32) -> (i32, i32) {
    %c0_i32 = arith.constant 0 : i32
    %c0_i32_0 = arith.constant 0 : i32
    %c0_i32_1 = arith.constant 0 : i32
    return %c0_i32, %c0_i32_0 : i32, i32
  }
  func.func @transform_5(%arg0: i32) -> (i32, i32, i32) {
    %c0_i32 = arith.constant 0 : i32
    %c0_i32_0 = arith.constant 0 : i32
    %c0_i32_1 = arith.constant 0 : i32
    return %arg0, %c0_i32, %c0_i32_0 : i32, i32, i32
  }
}

</mosaic_0001>

<bundles_post_ra>
// kernel: tpu_custom_call.1
= control target key start
LH: loop header
LB: loop body
LE: loop exit
PB: predicated region body
PF: predicated region fallthrough
CT: control target
= control target key end

     0   :  { %s915_s0 = inlined_call_operand.hbm [shape: f32[2,4,256], index: 0, kind: input, shape index: {}]   ;;  %s916_s1 = inlined_call_operand.vmem [shape: f32[4,1], index: 1, kind: input, shape index: {}]   ;;  %s917_s2 = inlined_call_operand.<no memory space> [shape: f32[1,1], index: 2, kind: input, shape index: {}]   ;;  %s918_s3 = inlined_call_operand.vmem [shape: f32[1,4], index: 3, kind: input, shape index: {}]   ;;  %s919_s4 = inlined_call_operand.vmem [shape: f32[1,4], index: 4, kind: input, shape index: {}]   ;;  %s920_s5 = inlined_call_operand.hbm [shape: f32[2,4,256], index: 5, kind: output, shape index: {}]  }
   0x1   :  { %v10_v0 = vstv %s917_s2 }
   0x2   :  { %11 = vst [vmem:[#allocation2] sm:$0x1] %v10_v0 }
   0x3   :  { %12 = vsyncpa [#allocation4], 0 }
   0x4   :  { %14 = vsyncpa [#allocation4 + $0x1], 0 }
   0x5   :  { %15 = vsyncpa [#allocation5], 0 }
   0x6   :  { %17 = vsyncpa [#allocation5 + $0x1], 0  ;;  %s761_s20 = smov 0   ;;  %s763_s21 = smov 0  }
   0x7   :  { %s765_s22 = smov 0   ;;  %s767_s23 = smov 0  }
   0x8 LB: > { %s782_s2 = sadd.s32 4294967295, %s721_s23   ;;  %s535_s24 = sadd.s32 4294967294, %s721_s23   ;;  %s721_s23 = sphi %s767_s23, %s937_s23   ;;  %s717_s22 = sphi %s765_s22, %s936_s22   ;;  %s713_s21 = sphi %s763_s21, %s935_s21   ;;  %s709_s20 = sphi %s761_s20, %s934_s20  }
   0x9   : > { %s786_s25 = sadd.s32 1, %s721_s23   ;;  %s30_s26 = sadd.s32 1, %s717_s22 }
   0xa   : > { %s27_s27 = ssub.s32 %s721_s23, %s786_s25  ;;  %p37_p0 = scmp.ne.s32.totalorder %s717_s22, %s713_s21 }
   0xb   : > { %p28_p1 = scmp.eq.s32.totalorder %s27_s27, 0  ;;  %p38_p2 = scmp.eq.s32.totalorder %s721_s23, 0 }
   0xc   : > { %p43_p3 = scmp.ne.s32.totalorder %s713_s21, %s709_s20  ;;  %p44_p4 = scmp.eq.s32.totalorder %s782_s2, 0 }
   0xd   : > { %s798_s28 = scalar_select %p28_p1, %s717_s22, %s30_s26  }
   0xe   : > { %p800_p5 = por %p38_p2, %p37_p0  ;;  %p804_p6 = por %p44_p4, %p43_p3 }
   0xf   : > { %p151_p7 = scmp.eq.s32.totalorder %s782_s2, 1  ;;  %p157_p8 = scmp.eq.s32.totalorder %s535_s24, 1 }
  0x10   : > { %s924_s30 = scalar_select %p804_p6, 1, 0 }
  0x11   : > { %p583_p10 = scmp.lt.s32.totalorder %s721_s23, 2  ;;  %p811_p11 = por %p151_p7, %p37_p0 }
  0x12   : > { %p815_p12 = por %p157_p8, %p43_p3  ;;  %s189_s8 = sand.u32 1, %s717_s22  }
  0x13   : > { %s925_s6 = scalar_select %p811_p11, 1, 0 }
  0x14   : > { %s926_s7 = scalar_select %p815_p12, 1, 0 }
  0x15   : > { %s555_s9 = sshll.u32 %s721_s23, 7  ;;  %s538_s10 = sshll.u32 %s189_s8, 3 }
  0x16   : > { %s824_s13 = scalar_lea.hbm %s915_s0, %s555_s9  ;;  %s193_s14 = scalar_lea.vmem [#allocation3], %s538_s10 }
  0x17   : > { %s201_s15 = sshll.u32 %s193_s14, 4  ;;  %p828_p13 = pnand %p583_p10, %p800_p5  ;;  %s832_s15 = int_to_ptr.vmem [resolvable:$true] %s201_s15 }
  0x18   : > { %s190_s17 = scalar_lea.sflag [#allocation4], %s189_s8  ;;  %s629_s18 = scalar_lea.hbm %s824_s13, 128 }
  0x19   : > { %p630_p2 = scmp.ne.s32.totalorder %s824_s13, %s629_s18  ;;  %p631_p3 = pneg %p828_p13 }
  0x1a   : > { %s634_s26 = scalar_lea.hbm %s915_s0, 256  ;;  %p635_p5 = scmp.lt.s32.totalorder %s824_s13, %s915_s0 }
  0x1b   : > { %p632_p4 = pnand %p631_p3, %p630_p2  ;;  %p636_p8 = scmp.lt.s32.totalorder %s634_s26, %s629_s18 }
  0x1d   : > { %p633_p7 = pneg %p632_p4  ;;  %p637_p10 = por %p636_p8, %p635_p5 }
  0x1f   : > { %p638_p9 = pnand %p637_p10, %p633_p7 }
  0x21   : > { %641 = shalt.err (!%p638_p9)
}
  0x22   : > { %s642_s8 = scalar_lea.vmem %s832_s15, 128  ;;  %s723_s9 = smov [#allocation3]  }
  0x23   : > { %p643_p0 = scmp.ne.s32.totalorder %s832_s15, %s642_s8  ;;  %s647_s10 = sshll.u32 %s723_s9, 4  ;;  %s648_s10 = int_to_ptr.vmem [resolvable:$false] %s647_s10 }
  0x24   : > { %s649_s11 = scalar_lea.vmem %s648_s10, 256  ;;  %p650_p4 = scmp.lt.s32.totalorder %s832_s15, %s648_s10 }
  0x25   : > { %p645_p1 = pnand %p643_p0, %p631_p3  ;;  %p651_p12 = scmp.lt.s32.totalorder %s649_s11, %s642_s8 }
  0x27   : > { %p646_p2 = pneg %p645_p1  ;;  %p652_p11 = por %p651_p12, %p650_p4 }
  0x29   : > { %p653_p6 = pnand %p652_p11, %p646_p2 }
  0x2b   : > { %656 = shalt.err (!%p653_p6)
}
  0x2c   : > { %578 = dma.hbm_to_vmem [thread:$0]  (!%p828_p13), %s824_s13, 128, %s832_s15, %s190_s17  }
  0x2d   : > { %p928_p9 = scmp.lt.s32.totalorder %s721_s23, 3  ;;  %p929_p7 = scmp.ge.s32.totalorder %s721_s23, 1 }
  0x2f   : > { %p207_p0 = pnand %p929_p7, %p928_p9 }
  0x30   : > { %s859_s12 = sand.u32 (!%p207_p0), 1, %s713_s21   ;;  %p930_p6 = scmp.ne.s32.totalorder (!%p207_p0), %s924_s30, 0 }
  0x31   : > { %210 = sbr.rel (%p207_p0) target bundleno = 793 (0x319), region = 40  ;;  %s542_s14 = sshll.u32 (!%p207_p0), %s859_s12, 3 }
  0x32   : > { %s213_s18 = scalar_lea.sflag (!%p207_p0), [#allocation4], %s859_s12  ;;  %s216_s16 = scalar_lea.vmem (!%p207_p0), [#allocation3], %s542_s14 }
  0x36   : > { %700 = dma.done.wait (%p930_p6), %s213_s18, 128  }
  0x37   : > { %702 = vsyncadd (%p930_p6), %s213_s18, 4294967168  ;;  %vm247_vm0 = vcmask 1043456   ;;  %v243_v1 = vld [vmem:[%s216_s16] sm:$0xff]  ;;  %v724_v6 = vmov 0.0   ;;  %vm725_vm1 = vmmov 0   ;;  %v257_v8 = vlaneseq  ;;  %s556_s26 = sshll.u32 %s782_s2, 7 }
  0x38   : > { %v245_v2 = vcombine.high %v243_v1, %v243_v1  ;;  %v248_v3 = vsel %vm247_vm0, %v243_v1, 0.0  ;;  %561 = vmatprep.subr.mxu0 %v724_v6  ;;  %v254_v7 = vld [vmem:[%s916_s1] sm:$0xf]  ;;  %566 = vmatprep.subr.mxu1 %v724_v6  ;;  %vm263_vm2 = vcmask 31744   ;;  %vm352_vm3 = vcmask 1040384   ;;  %s242_s27 = scalar_lea.vmem [#allocation6], %s542_s14  ;;  %s463_s10 = scalar_lea.hbm %s920_s5, %s556_s26 }
  0x39   : > { %562 = vmatpush3.msk.msra.mxu0 %vm247_vm0, %v254_v7  ;;  %563 = vmatprep.mubr.msk.f32.mxu0 %vm725_vm1, %v724_v6  ;;  %v258_v9 = vand.u32 127, %v257_v8  ;;  %v260_v10 = vshrl.u32 %v257_v8, 7  ;;  %v346_v15 = vld [vmem:[%s918_s3] sm:$0x1]  ;;  %vm348_vm4 = vcmask 7168   ;;  %s465_s29 = sshll.u32 %s242_s27, 4  ;;  %s466_s29 = int_to_ptr.vmem [resolvable:$true] %s465_s29 }
  0x3a   : > { %v249_v4 = vsel %vm247_vm0, %v245_v2, 0.0  ;;  %568 = vmatprep.mubr.msk.f32.mxu1 %vm725_vm1, %v724_v6  ;;  %567 = vmatpush3.msk.msra.mxu1 %vm352_vm3, %v346_v15  ;;  %v255_v16 = vld [vmem:[#allocation2] sm:$0x1]  ;;  %v726_v35 = vmov 839922192   ;;  %s451_s11 = scalar_lea.sflag [#allocation5], %s859_s12 }
  0x3b   : > { %v250_v5 = vadd.f32 %v249_v4, %v248_v3  ;;  %v261_v11 = vsub.s32 %v258_v9, %v260_v10  ;;  %v347_v25 = vld [vmem:[%s919_s4] sm:$0x1]  ;;  %v434_v32 = vsub.s32 0, %v260_v10  ;;  %v441_v36 = vunpack.c.l.s4 %v726_v35  ;;  %s657_s18 = scalar_lea.vmem %s466_s29, 128  ;;  %p931_p12 = scmp.ne.s32.totalorder %s925_s6, 0 }
  0x3c   : > { %p658_p11 = scmp.ne.s32.totalorder %s466_s29, %s657_s18  ;;  %s727_s16 = smov [#allocation6]  }
  0x3d   : > { %251 = vadd.xlane.f32.xlu0 %v250_v5  ;;  %v442_v37 = vunpack.c.0.s8 %v441_v36  ;;  %s661_s13 = sshll.u32 %s727_s16, 4  ;;  %s662_s13 = int_to_ptr.vmem [resolvable:$false] %s661_s13 }
  0x3e   : > { %p659_p13 = pnand %p658_p11, %p931_p12  ;;  %s663_s2 = scalar_lea.vmem %s662_s13, 256 }
  0x3f   : > { %v445_v38 = vsub.s32 %v442_v37, %v260_v10  ;;  %p664_p3 = scmp.lt.s32.totalorder %s466_s29, %s662_s13  ;;  %p665_p5 = scmp.lt.s32.totalorder %s663_s2, %s657_s18 }
  0x40   : > { %p660_p1 = pneg %p659_p13 }
  0x41   : > { %p666_p8 = por %p665_p5, %p664_p3 }
  0x43   : > { %p667_p10 = pnand %p666_p8, %p660_p1 }
  0xc6   : > { %v252_v12 = vpop.xlane.xlu0 %251 }
  0xc7   : > { %v253_v13 = vmul.f32 0.00390625, %v252_v12 }
  0xc9   : > { %v262_v14 = vrot.slane %v253_v13, %v261_v11 }
  0xcb   : > { %564 = vmatmul.mubr.msk.f32.vlgmr.msra.gmra.mxu0 %vm263_vm2, %v262_v14 }
 0x18b   : > { %v335_v17 = vpop.f32.mrf.mxu0 }
 0x18c   : > { %v336_v18 = vadd.f32 %v335_v17, %v255_v16 }
 0x18d   : > { %v565_v19 = vpop.f32.mrf.mxu0 }
 0x18e   : > { %v546_v20 = vmul.f32 -1.442695, %v336_v18 }
 0x190   : > { %621 = vpow2.f32 %v546_v20 }
 0x19d   : > { %v622_v21 = vpop.eup %621 }
 0x19e   : > { %v342_v22 = vadd.f32 1.0, %v622_v21 }
 0x1a0   : > { %623 = vrcp.f32 %v342_v22 }
 0x1ad   : > { %v624_v23 = vpop.eup %623 }
 0x1ae   : > { %v345_v24 = vmul.f32 %v624_v23, %v336_v18 }
 0x1b0   : > { %569 = vmatmul.mubr.msk.f32.vlgmr.msra.gmra.mxu1 %vm348_vm4, %v345_v24 }
 0x270   : > { %v422_v26 = vpop.f32.mrf.mxu1 }
 0x271   : > { %v423_v27 = vadd.f32 %v422_v26, %v347_v25 }
 0x272   : > { %v570_v28 = vpop.f32.mrf.mxu1 }
 0x273   : > { %v549_v29 = vmul.f32 -1.442695, %v423_v27 }
 0x275   : > { %625 = vpow2.f32 %v549_v29 }
 0x282   : > { %v626_v30 = vpop.eup %625 }
 0x283   : > { %v429_v31 = vadd.f32 1.0, %v626_v30 }
 0x285   : > { %627 = vrcp.f32 %v429_v31 }
 0x292   : > { %v628_v33 = vpop.eup %627 }
 0x293   : > { %v435_v34 = vrot.slane %v628_v33, %v434_v32 }
 0x295   : > { %437 = vbcast.lane.b32.xlu0 %v435_v34, 256 }
 0x307   : > { %v438_v39 = vpop.permute.xlu0 %437 }
 0x308   : > { %v446_v40 = vrot.slane %v438_v39, %v445_v38 }
 0x30a   : > { %v448_v41 = vmul.f32 %v446_v40, %v243_v1 }
 0x30c   : > { %449 = vst [vmem:[%s242_s27] sm:$0xff] %v448_v41 }
 0x30d   : > { %670 = shalt.err (!%p667_p10)
}
 0x30e   : > { %s671_s14 = scalar_lea.hbm %s463_s10, 128  ;;  %s675_s30 = scalar_lea.hbm %s920_s5, 256 }
 0x30f   : > { %p672_p2 = scmp.ne.s32.totalorder %s463_s10, %s671_s14  ;;  %p676_p7 = scmp.lt.s32.totalorder %s463_s10, %s920_s5 }
 0x310   : > { %p677_p0 = scmp.lt.s32.totalorder %s675_s30, %s671_s14 }
 0x311   : > { %p673_p4 = pnand %p672_p2, %p931_p12 }
 0x312   : > { %p678_p6 = por %p677_p0, %p676_p7 }
 0x313   : > { %p674_p9 = pneg %p673_p4 }
 0x315   : > { %p679_p11 = pnand %p678_p6, %p674_p9 }
 0x317   : > { %682 = shalt.err (!%p679_p11)
}
 0x318   : > { %573 = dma.vmem_to_hbm [thread:$0]  (%p931_p12), %s466_s29, 128, %s463_s10, %s451_s11  }
 0x319 PF: > { %s477_s24 = sand.u32 1, %s709_s20   ;;  %p932_p13 = scmp.ne.s32.totalorder %s926_s7, 0 }
 0x31a   : > { %p933_p1 = scmp.ge.s32.totalorder %s721_s23, 2  ;;  %s478_s26 = scalar_lea.sflag [#allocation5], %s477_s24 }
 0x31c   : > { %p580_p3 = pnand %p933_p1, %p932_p13 }
 0x31e   : > { %p581_p5 = pneg %p580_p3 }
 0x320   : > { %704 = dma.done.wait (%p581_p5), %s478_s26, 128  }
 0x321   : > { %706 = vsyncadd (%p581_p5), %s478_s26, 4294967168  ;;  %p20_p8 = scmp.ge.s32.totalorder %s786_s25, 4   ;;  %s934_s20 = smov %s713_s21 }
 0x322   : > { %s935_s21 = smov %s717_s22  ;;  %s936_s22 = smov %s798_s28 }
 0x323   : > { %s937_s23 = smov %s786_s25  ;;  %22 = sbr.rel (!%p20_p8) target bundleno = 8 (0x8), region = 85 }
 0x328   :  { %483 = vsyncpa [#allocation4], 1 }
 0x329   :  { %485 = vsyncpa [#allocation4 + $0x1], 1 }
 0x32a   :  { %486 = vsyncpa [#allocation5], 1 }
 0x32b   :  { %488 = vsyncpa [#allocation5 + $0x1], 1 }

</bundles_post_ra>
